<compile_context>
chip_gen: v7x
topology: tpu7x:2x2x1
jax: 0.10.0
libtpu: 0.0.40
codegen_flags: <defaults>
</compile_context>

<pallas_src>
import functools

import jax
import jax.numpy as jnp
from jax.experimental import pallas as pl
from jax.experimental.pallas import tpu as pltpu

LRELU_SLOPE = 0.01
BN_EPS = 1e-5
PAD = 128        # lane width: every feature dimension is zero-padded to 128
N_LAYERS = 4     # number of MLP_Unit blocks before last_layer
SUBLANE = 16     # bf16 sublane tile height -> weight-slab row alignment


def _packing(input_size):
    """Static compact-slab layout.

    Returns (kp, off, total): per-layer fan_in padded up to a multiple of 16
    sublanes, the static row offset of each layer's weight inside the flat
    (total, 128) slab, and the total row count.
    """
    assert SUBLANE <= input_size <= PAD, "kernel supports 16 <= input_size <= 128"
    fan_in = [input_size, input_size // 2, input_size // 4,
              input_size // 8, input_size // 16]
    kp = [-(-k // SUBLANE) * SUBLANE for k in fan_in]
    off = [0]
    for k in kp[:-1]:
        off.append(off[-1] + k)
    return tuple(kp), tuple(off), off[-1] + kp[-1]


def mlp_kernel(x_ref, w_ref, v_ref, o_ref, *, kp, off):
    """x_ref: (B, 128) f32   w_ref: (sum(kp), 128) bf16   v_ref: (16, 128) f32
    o_ref: (B, 128) f32

    w_ref rows [off[i], off[i]+kp[i]) hold layer i's (fan_in, fan_out) weight,
    zero-padded to (kp[i], 128) and transposed to (in, out) layout.
    v_ref rows: [0..3] gamma_1..4, [4..7] beta_1..4, [8] last-layer bias.
    Linear biases of blocks 1-4 are omitted: they are exactly cancelled by the
    training-mode BatchNorm mean subtraction.
    Padded lanes stay exactly zero through every layer (weights / gamma / beta
    are zero in the pad region), so lane-slicing h to kp[i] is exact.
    """
    inv_b = 1.0 / x_ref.shape[0]          # true batch; block rows are unpadded
    vecs = v_ref[...]                     # (16, 128) f32, loaded once
    h = x_ref[...]

    for i in range(N_LAYERS):
        # Linear (bias dropped: cancelled by BN).  bf16 x bf16 -> f32 acc,
        # single-pass MXU, only kp[i] weight rows pushed (static-aligned slice).
        w_i = w_ref[off[i]:off[i] + kp[i], :]
        y = jnp.dot(h[:, :kp[i]].astype(jnp.bfloat16), w_i,
                    preferred_element_type=jnp.float32)

        # One-pass training-mode BatchNorm (biased variance) folded into a
        # single affine:  y*scale + shift.
        s1 = jnp.sum(y, axis=0, keepdims=True)
        s2 = jnp.sum(y * y, axis=0, keepdims=True)
        mean = s1 * inv_b
        var = s2 * inv_b - mean * mean
        scale = vecs[i:i + 1, :] * jax.lax.rsqrt(var + BN_EPS)
        shift = vecs[N_LAYERS + i:N_LAYERS + i + 1, :] - mean * scale
        y = y * scale + shift

        # LeakyReLU(0.01) == max(y, 0.01*y); Dropout(p=0) is identity.
        h = jnp.maximum(y, LRELU_SLOPE * y)

    # last_layer: plain Linear, bias kept.
    i = N_LAYERS
    w_i = w_ref[off[i]:off[i] + kp[i], :]
    out = jnp.dot(h[:, :kp[i]].astype(jnp.bfloat16), w_i,
                  preferred_element_type=jnp.float32)
    o_ref[...] = (out + vecs[2 * N_LAYERS:2 * N_LAYERS + 1, :]).astype(o_ref.dtype)


@functools.partial(jax.jit, static_argnames=("output_size",))
def mlp_3_normalized_medium(x, w_slab, v_slab, *, output_size):
    batch, input_size = x.shape
    kp, off, _ = _packing(input_size)

    # No host-side pad op when the input is already 128 lanes wide.
    x_pad = x if input_size == PAD else jnp.pad(x, ((0, 0), (0, PAD - input_size)))

    vmem = pl.BlockSpec(memory_space=pltpu.MemorySpace.VMEM)
    out_pad = pl.pallas_call(
        functools.partial(mlp_kernel, kp=kp, off=off),
        out_shape=jax.ShapeDtypeStruct((batch, PAD), jnp.float32),
        in_specs=[vmem, vmem, vmem],
        out_specs=vmem,
    )(x_pad, w_slab, v_slab)
    # Downstream consumers could keep the padded (B, 128) slab; slice once here
    # to match the module's declared output width.
    return out_pad[:, :output_size]


def init_params(key, input_size, output_size):
    """Deterministic parameters in PyTorch layout. Linear weights stored
    transposed as (in, out); biases / BN params stored as (out,)."""
    dims = [input_size, input_size // 2, input_size // 4,
            input_size // 8, input_size // 16]
    params = []
    keys = jax.random.split(key, 10)
    ki = 0
    for i in range(N_LAYERS):
        fan_in, fan_out = dims[i], dims[i + 1]
        bound = 1.0 / (fan_in ** 0.5)
        w = jax.random.uniform(keys[ki], (fan_in, fan_out), jnp.float32,
                               minval=-bound, maxval=bound); ki += 1
        b = jax.random.uniform(keys[ki], (fan_out,), jnp.float32,
                               minval=-bound, maxval=bound); ki += 1
        gamma = jnp.ones((fan_out,), jnp.float32)    # BN weight init
        beta = jnp.zeros((fan_out,), jnp.float32)    # BN bias init
        params += [w, b, gamma, beta]
    fan_in = dims[4]
    bound = 1.0 / (fan_in ** 0.5)
    w5 = jax.random.uniform(keys[ki], (fan_in, output_size), jnp.float32,
                            minval=-bound, maxval=bound); ki += 1
    b5 = jax.random.uniform(keys[ki], (output_size,), jnp.float32,
                            minval=-bound, maxval=bound)
    params += [w5, b5]
    return params


def pack_params(params, input_size):
    """Pack the 22 small tensors into two VMEM-friendly slabs.

    w_slab: flat (sum(kp), 128) bf16 compact weight slab (zero-padded rows/lanes).
    v_slab: (16, 128) f32 -- rows 0-3 gamma_1..4, 4-7 beta_1..4, 8 last bias.
            Kept f32: it is only 8 KB and the BN affine / final bias math is f32.
    Linear biases b1-b4 are NOT packed (exactly cancelled by training-mode BN)."""
    kp, off, total = _packing(input_size)
    w_slab = jnp.zeros((total, PAD), jnp.bfloat16)
    v_slab = jnp.zeros((16, PAD), jnp.float32)
    for i in range(N_LAYERS):
        w, _b, gamma, beta = params[4 * i: 4 * i + 4]
        fin, fout = w.shape
        w_slab = w_slab.at[off[i]:off[i] + fin, :fout].set(w.astype(jnp.bfloat16))
        v_slab = v_slab.at[i, :fout].set(gamma)
        v_slab = v_slab.at[N_LAYERS + i, :fout].set(beta)
    w5, b5 = params[-2:]
    w_slab = w_slab.at[off[N_LAYERS]:off[N_LAYERS] + w5.shape[0],
                       :w5.shape[1]].set(w5.astype(jnp.bfloat16))
    v_slab = v_slab.at[2 * N_LAYERS, :b5.shape[0]].set(b5)
    return w_slab, v_slab


def reference_forward(x, params, *, bf16_operands=False):
    """Pure-JAX, PyTorch-faithful reference (keeps the BN-cancelled biases).
    bf16_operands=True mimics the kernel's bf16 matmul-operand rounding with
    f32 accumulation, for a tight-tolerance comparison."""
    def q(v):
        return v.astype(jnp.bfloat16) if bf16_operands else v
    h = x
    for i in range(N_LAYERS):
        w, b, g, be = params[4 * i: 4 * i + 4]
        y = jnp.dot(q(h), q(w), preferred_element_type=jnp.float32) + b
        mean = jnp.mean(y, axis=0, keepdims=True)
        var = jnp.mean((y - mean) ** 2, axis=0, keepdims=True)
        y = (y - mean) * jax.lax.rsqrt(var + BN_EPS) * g + be
        h = jnp.maximum(y, LRELU_SLOPE * y)
    w5, b5 = params[-2:]
    return jnp.dot(q(h), q(w5), preferred_element_type=jnp.float32) + b5


if __name__ == "__main__":
    input_size = 128
    output_size = 4
    batch = 16

    key = jax.random.PRNGKey(0)
    kx, kparam = jax.random.split(key)
    x = jax.random.normal(kx, (batch, input_size), jnp.float32)
    params = init_params(kparam, input_size, output_size)
    w_slab, v_slab = pack_params(params, input_size)

    out = mlp_3_normalized_medium(x, w_slab, v_slab, output_size=output_size)
    out = jax.block_until_ready(out)
    assert out.shape == (batch, output_size)

    # Tight check vs a reference that applies the same bf16 operand rounding.
    ref_bf16 = reference_forward(x, params, bf16_operands=True)
    assert jnp.allclose(out, ref_bf16, atol=1e-2, rtol=1e-2), \
        float(jnp.max(jnp.abs(out - ref_bf16)))

    # Loose sanity check vs the full-f32 PyTorch-faithful reference; the slack
    # only accounts for bf16 weight/activation rounding through 5 layers.
    ref_f32 = reference_forward(x, params, bf16_operands=False)
    assert jnp.allclose(out, ref_f32, atol=1e-1, rtol=1e-1), \
        float(jnp.max(jnp.abs(out - ref_f32)))

    print("KERNEL_OK")
</pallas_src>

<mosaic_0001>
module attributes {stable_mosaic.version = 11 : i64} {
  func.func @mlp_kernel(%arg0: memref<16x128xf32, #tpu.memory_space<vmem>>, %arg1: memref<256x128xbf16, #tpu.memory_space<vmem>>, %arg2: memref<16x128xf32, #tpu.memory_space<vmem>>, %arg3: memref<16x128xf32, #tpu.memory_space<vmem>>) attributes {dimension_semantics = [], scalar_prefetch = 0 : i64, scratch_operands = 0 : i64, tpu.core_type = #tpu.core_type<tc>} {
    %c0 = arith.constant 0 : index
    %c0_0 = arith.constant 0 : index
    %0 = vector.load %arg2[%c0, %c0_0] : memref<16x128xf32, #tpu.memory_space<vmem>>, vector<16x128xf32>
    %c0_1 = arith.constant 0 : index
    %c0_2 = arith.constant 0 : index
    %1 = vector.load %arg0[%c0_1, %c0_2] : memref<16x128xf32, #tpu.memory_space<vmem>>, vector<16x128xf32>
    %c0_3 = arith.constant 0 : index
    %c0_4 = arith.constant 0 : index
    %2 = vector.load %arg1[%c0_3, %c0_4] : memref<256x128xbf16, #tpu.memory_space<vmem>>, vector<128x128xbf16>
    %3 = arith.truncf %1 : vector<16x128xf32> to vector<16x128xbf16>
    %cst = arith.constant dense<0.000000e+00> : vector<16x128xf32>
    %4 = tpu.matmul %3, %2, %cst {dimension_numbers = #tpu.dot_dimension_numbers<[1], [0], [0], [1], [0, 0, 1, 1], [], []>} : vector<16x128xbf16>, vector<128x128xbf16>, vector<16x128xf32> -> vector<16x128xf32>
    %cst_5 = arith.constant dense<0.000000e+00> : vector<128xf32>
    %5 = vector.multi_reduction <add>, %4, %cst_5 [0] : vector<16x128xf32> to vector<128xf32>
    %6 = vector.shape_cast %5 : vector<128xf32> to vector<1x128xf32>
    %7 = arith.mulf %4, %4 : vector<16x128xf32>
    %cst_6 = arith.constant dense<0.000000e+00> : vector<128xf32>
    %8 = vector.multi_reduction <add>, %7, %cst_6 [0] : vector<16x128xf32> to vector<128xf32>
    %9 = vector.shape_cast %8 : vector<128xf32> to vector<1x128xf32>
    %cst_7 = arith.constant 6.250000e-02 : f32
    %10 = vector.broadcast %cst_7 : f32 to vector<1x128xf32>
    %11 = arith.mulf %6, %10 : vector<1x128xf32>
    %cst_8 = arith.constant 6.250000e-02 : f32
    %12 = vector.broadcast %cst_8 : f32 to vector<1x128xf32>
    %13 = arith.mulf %9, %12 : vector<1x128xf32>
    %14 = arith.mulf %11, %11 : vector<1x128xf32>
    %15 = arith.subf %13, %14 : vector<1x128xf32>
    %16 = vector.extract_strided_slice %0 {offsets = [0, 0], sizes = [1, 128], strides = [1, 1]} : vector<16x128xf32> to vector<1x128xf32>
    %cst_9 = arith.constant 9.99999974E-6 : f32
    %17 = vector.broadcast %cst_9 : f32 to vector<1x128xf32>
    %18 = arith.addf %15, %17 : vector<1x128xf32>
    %19 = math.rsqrt %18 : vector<1x128xf32>
    %20 = arith.mulf %16, %19 : vector<1x128xf32>
    %21 = vector.extract_strided_slice %0 {offsets = [4, 0], sizes = [1, 128], strides = [1, 1]} : vector<16x128xf32> to vector<1x128xf32>
    %22 = arith.mulf %11, %20 : vector<1x128xf32>
    %23 = arith.subf %21, %22 : vector<1x128xf32>
    %24 = vector.broadcast %20 : vector<1x128xf32> to vector<16x128xf32>
    %25 = arith.mulf %4, %24 : vector<16x128xf32>
    %26 = vector.broadcast %23 : vector<1x128xf32> to vector<16x128xf32>
    %27 = arith.addf %25, %26 : vector<16x128xf32>
    %cst_10 = arith.constant 0.00999999977 : f32
    %28 = vector.broadcast %cst_10 : f32 to vector<16x128xf32>
    %29 = arith.mulf %28, %27 : vector<16x128xf32>
    %30 = arith.maximumf %27, %29 : vector<16x128xf32>
    %c128 = arith.constant 128 : index
    %c0_11 = arith.constant 0 : index
    %31 = vector.load %arg1[%c128, %c0_11] : memref<256x128xbf16, #tpu.memory_space<vmem>>, vector<64x128xbf16>
    %32 = vector.extract_strided_slice %30 {offsets = [0, 0], sizes = [16, 64], strides = [1, 1]} : vector<16x128xf32> to vector<16x64xf32>
    %33 = arith.truncf %32 : vector<16x64xf32> to vector<16x64xbf16>
    %cst_12 = arith.constant dense<0.000000e+00> : vector<16x128xf32>
    %34 = tpu.matmul %33, %31, %cst_12 {dimension_numbers = #tpu.dot_dimension_numbers<[1], [0], [0], [1], [0, 0, 1, 1], [], []>} : vector<16x64xbf16>, vector<64x128xbf16>, vector<16x128xf32> -> vector<16x128xf32>
    %cst_13 = arith.constant dense<0.000000e+00> : vector<128xf32>
    %35 = vector.multi_reduction <add>, %34, %cst_13 [0] : vector<16x128xf32> to vector<128xf32>
    %36 = vector.shape_cast %35 : vector<128xf32> to vector<1x128xf32>
    %37 = arith.mulf %34, %34 : vector<16x128xf32>
    %cst_14 = arith.constant dense<0.000000e+00> : vector<128xf32>
    %38 = vector.multi_reduction <add>, %37, %cst_14 [0] : vector<16x128xf32> to vector<128xf32>
    %39 = vector.shape_cast %38 : vector<128xf32> to vector<1x128xf32>
    %cst_15 = arith.constant 6.250000e-02 : f32
    %40 = vector.broadcast %cst_15 : f32 to vector<1x128xf32>
    %41 = arith.mulf %36, %40 : vector<1x128xf32>
    %cst_16 = arith.constant 6.250000e-02 : f32
    %42 = vector.broadcast %cst_16 : f32 to vector<1x128xf32>
    %43 = arith.mulf %39, %42 : vector<1x128xf32>
    %44 = arith.mulf %41, %41 : vector<1x128xf32>
    %45 = arith.subf %43, %44 : vector<1x128xf32>
    %46 = vector.extract_strided_slice %0 {offsets = [1, 0], sizes = [1, 128], strides = [1, 1]} : vector<16x128xf32> to vector<1x128xf32>
    %cst_17 = arith.constant 9.99999974E-6 : f32
    %47 = vector.broadcast %cst_17 : f32 to vector<1x128xf32>
    %48 = arith.addf %45, %47 : vector<1x128xf32>
    %49 = math.rsqrt %48 : vector<1x128xf32>
    %50 = arith.mulf %46, %49 : vector<1x128xf32>
    %51 = vector.extract_strided_slice %0 {offsets = [5, 0], sizes = [1, 128], strides = [1, 1]} : vector<16x128xf32> to vector<1x128xf32>
    %52 = arith.mulf %41, %50 : vector<1x128xf32>
    %53 = arith.subf %51, %52 : vector<1x128xf32>
    %54 = vector.broadcast %50 : vector<1x128xf32> to vector<16x128xf32>
    %55 = arith.mulf %34, %54 : vector<16x128xf32>
    %56 = vector.broadcast %53 : vector<1x128xf32> to vector<16x128xf32>
    %57 = arith.addf %55, %56 : vector<16x128xf32>
    %cst_18 = arith.constant 0.00999999977 : f32
    %58 = vector.broadcast %cst_18 : f32 to vector<16x128xf32>
    %59 = arith.mulf %58, %57 : vector<16x128xf32>
    %60 = arith.maximumf %57, %59 : vector<16x128xf32>
    %c192 = arith.constant 192 : index
    %c0_19 = arith.constant 0 : index
    %61 = vector.load %arg1[%c192, %c0_19] : memref<256x128xbf16, #tpu.memory_space<vmem>>, vector<32x128xbf16>
    %62 = vector.extract_strided_slice %60 {offsets = [0, 0], sizes = [16, 32], strides = [1, 1]} : vector<16x128xf32> to vector<16x32xf32>
    %63 = arith.truncf %62 : vector<16x32xf32> to vector<16x32xbf16>
    %cst_20 = arith.constant dense<0.000000e+00> : vector<16x128xf32>
    %64 = tpu.matmul %63, %61, %cst_20 {dimension_numbers = #tpu.dot_dimension_numbers<[1], [0], [0], [1], [0, 0, 1, 1], [], []>} : vector<16x32xbf16>, vector<32x128xbf16>, vector<16x128xf32> -> vector<16x128xf32>
    %cst_21 = arith.constant dense<0.000000e+00> : vector<128xf32>
    %65 = vector.multi_reduction <add>, %64, %cst_21 [0] : vector<16x128xf32> to vector<128xf32>
    %66 = vector.shape_cast %65 : vector<128xf32> to vector<1x128xf32>
    %67 = arith.mulf %64, %64 : vector<16x128xf32>
    %cst_22 = arith.constant dense<0.000000e+00> : vector<128xf32>
    %68 = vector.multi_reduction <add>, %67, %cst_22 [0] : vector<16x128xf32> to vector<128xf32>
    %69 = vector.shape_cast %68 : vector<128xf32> to vector<1x128xf32>
    %cst_23 = arith.constant 6.250000e-02 : f32
    %70 = vector.broadcast %cst_23 : f32 to vector<1x128xf32>
    %71 = arith.mulf %66, %70 : vector<1x128xf32>
    %cst_24 = arith.constant 6.250000e-02 : f32
    %72 = vector.broadcast %cst_24 : f32 to vector<1x128xf32>
    %73 = arith.mulf %69, %72 : vector<1x128xf32>
    %74 = arith.mulf %71, %71 : vector<1x128xf32>
    %75 = arith.subf %73, %74 : vector<1x128xf32>
    %76 = vector.extract_strided_slice %0 {offsets = [2, 0], sizes = [1, 128], strides = [1, 1]} : vector<16x128xf32> to vector<1x128xf32>
    %cst_25 = arith.constant 9.99999974E-6 : f32
    %77 = vector.broadcast %cst_25 : f32 to vector<1x128xf32>
    %78 = arith.addf %75, %77 : vector<1x128xf32>
    %79 = math.rsqrt %78 : vector<1x128xf32>
    %80 = arith.mulf %76, %79 : vector<1x128xf32>
    %81 = vector.extract_strided_slice %0 {offsets = [6, 0], sizes = [1, 128], strides = [1, 1]} : vector<16x128xf32> to vector<1x128xf32>
    %82 = arith.mulf %71, %80 : vector<1x128xf32>
    %83 = arith.subf %81, %82 : vector<1x128xf32>
    %84 = vector.broadcast %80 : vector<1x128xf32> to vector<16x128xf32>
    %85 = arith.mulf %64, %84 : vector<16x128xf32>
    %86 = vector.broadcast %83 : vector<1x128xf32> to vector<16x128xf32>
    %87 = arith.addf %85, %86 : vector<16x128xf32>
    %cst_26 = arith.constant 0.00999999977 : f32
    %88 = vector.broadcast %cst_26 : f32 to vector<16x128xf32>
    %89 = arith.mulf %88, %87 : vector<16x128xf32>
    %90 = arith.maximumf %87, %89 : vector<16x128xf32>
    %c224 = arith.constant 224 : index
    %c0_27 = arith.constant 0 : index
    %91 = vector.load %arg1[%c224, %c0_27] : memref<256x128xbf16, #tpu.memory_space<vmem>>, vector<16x128xbf16>
    %92 = vector.extract_strided_slice %90 {offsets = [0, 0], sizes = [16, 16], strides = [1, 1]} : vector<16x128xf32> to vector<16x16xf32>
    %93 = arith.truncf %92 : vector<16x16xf32> to vector<16x16xbf16>
    %cst_28 = arith.constant dense<0.000000e+00> : vector<16x128xf32>
    %94 = tpu.matmul %93, %91, %cst_28 {dimension_numbers = #tpu.dot_dimension_numbers<[1], [0], [0], [1], [0, 0, 1, 1], [], []>} : vector<16x16xbf16>, vector<16x128xbf16>, vector<16x128xf32> -> vector<16x128xf32>
    %cst_29 = arith.constant dense<0.000000e+00> : vector<128xf32>
    %95 = vector.multi_reduction <add>, %94, %cst_29 [0] : vector<16x128xf32> to vector<128xf32>
    %96 = vector.shape_cast %95 : vector<128xf32> to vector<1x128xf32>
    %97 = arith.mulf %94, %94 : vector<16x128xf32>
    %cst_30 = arith.constant dense<0.000000e+00> : vector<128xf32>
    %98 = vector.multi_reduction <add>, %97, %cst_30 [0] : vector<16x128xf32> to vector<128xf32>
    %99 = vector.shape_cast %98 : vector<128xf32> to vector<1x128xf32>
    %cst_31 = arith.constant 6.250000e-02 : f32
    %100 = vector.broadcast %cst_31 : f32 to vector<1x128xf32>
    %101 = arith.mulf %96, %100 : vector<1x128xf32>
    %cst_32 = arith.constant 6.250000e-02 : f32
    %102 = vector.broadcast %cst_32 : f32 to vector<1x128xf32>
    %103 = arith.mulf %99, %102 : vector<1x128xf32>
    %104 = arith.mulf %101, %101 : vector<1x128xf32>
    %105 = arith.subf %103, %104 : vector<1x128xf32>
    %106 = vector.extract_strided_slice %0 {offsets = [3, 0], sizes = [1, 128], strides = [1, 1]} : vector<16x128xf32> to vector<1x128xf32>
    %cst_33 = arith.constant 9.99999974E-6 : f32
    %107 = vector.broadcast %cst_33 : f32 to vector<1x128xf32>
    %108 = arith.addf %105, %107 : vector<1x128xf32>
    %109 = math.rsqrt %108 : vector<1x128xf32>
    %110 = arith.mulf %106, %109 : vector<1x128xf32>
    %111 = vector.extract_strided_slice %0 {offsets = [7, 0], sizes = [1, 128], strides = [1, 1]} : vector<16x128xf32> to vector<1x128xf32>
    %112 = arith.mulf %101, %110 : vector<1x128xf32>
    %113 = arith.subf %111, %112 : vector<1x128xf32>
    %114 = vector.broadcast %110 : vector<1x128xf32> to vector<16x128xf32>
    %115 = arith.mulf %94, %114 : vector<16x128xf32>
    %116 = vector.broadcast %113 : vector<1x128xf32> to vector<16x128xf32>
    %117 = arith.addf %115, %116 : vector<16x128xf32>
    %cst_34 = arith.constant 0.00999999977 : f32
    %118 = vector.broadcast %cst_34 : f32 to vector<16x128xf32>
    %119 = arith.mulf %118, %117 : vector<16x128xf32>
    %120 = arith.maximumf %117, %119 : vector<16x128xf32>
    %c240 = arith.constant 240 : index
    %c0_35 = arith.constant 0 : index
    %121 = vector.load %arg1[%c240, %c0_35] : memref<256x128xbf16, #tpu.memory_space<vmem>>, vector<16x128xbf16>
    %122 = vector.extract_strided_slice %120 {offsets = [0, 0], sizes = [16, 16], strides = [1, 1]} : vector<16x128xf32> to vector<16x16xf32>
    %123 = arith.truncf %122 : vector<16x16xf32> to vector<16x16xbf16>
    %cst_36 = arith.constant dense<0.000000e+00> : vector<16x128xf32>
    %124 = tpu.matmul %123, %121, %cst_36 {dimension_numbers = #tpu.dot_dimension_numbers<[1], [0], [0], [1], [0, 0, 1, 1], [], []>} : vector<16x16xbf16>, vector<16x128xbf16>, vector<16x128xf32> -> vector<16x128xf32>
    %125 = vector.extract_strided_slice %0 {offsets = [8, 0], sizes = [1, 128], strides = [1, 1]} : vector<16x128xf32> to vector<1x128xf32>
    %126 = vector.broadcast %125 : vector<1x128xf32> to vector<16x128xf32>
    %127 = arith.addf %124, %126 : vector<16x128xf32>
    %c0_37 = arith.constant 0 : index
    %c0_38 = arith.constant 0 : index
    %128 = vector.load %arg3[%c0_37, %c0_38] : memref<16x128xf32, #tpu.memory_space<vmem>>, vector<16x128xf32>
    tpu.vector_store %arg3[%c0_37, %c0_38], %127 {strides = array<i32>} : memref<16x128xf32, #tpu.memory_space<vmem>>, vector<16x128xf32>,
    return
  }
}

</mosaic_0001>

<bundles_post_ra>
// kernel: mlp_3_normalized_medium.1
= control target key start
LH: loop header
LB: loop body
LE: loop exit
PB: predicated region body
PF: predicated region fallthrough
CT: control target
= control target key end

     0   :  { %8 = vsyncpa [#allocation3], 0  ;;  %s920_s0 = inlined_call_operand.hbm [shape: f32[16,128], index: 0, kind: input, shape index: {}]   ;;  %s921_s1 = inlined_call_operand.hbm [shape: bf16[256,128], index: 1, kind: input, shape index: {}]   ;;  %s922_s2 = inlined_call_operand.hbm [shape: f32[16,128], index: 2, kind: input, shape index: {}]   ;;  %s923_s3 = inlined_call_operand.vmem [shape: f32[16,128], index: 3, kind: output, shape index: {}]  }
   0x1   :  { %9 = vsyncpa [#allocation5], 0  ;;  %s797_s12 = smov [#allocation4]   ;;  %s727_s16 = scalar_lea.hbm %s921_s1, 2048 }
   0x2   :  { %s27_s13 = sshll.u32 %s797_s12, 4  ;;  %p728_p0 = scmp.ne.s32.totalorder %s921_s1, %s727_s16  ;;  %s28_s13 = int_to_ptr.vmem [resolvable:$true] %s27_s13 }
   0x3   :  { %p731_p1 = scmp.lt.u32.totalorder %s727_s16, %s921_s1 }
   0x5   :  { %p733_p2 = pnand %p731_p1, %p728_p0 }
   0x7   :  { %736 = shalt.err (!%p733_p2)
}
   0x8   :  { %s737_s21 = scalar_lea.vmem %s28_s13, 2048  ;;  %p742_p4 = scmp.lt.s32.totalorder %s28_s13, %s28_s13 }
   0x9   :  { %p738_p3 = scmp.ne.s32.totalorder %s28_s13, %s737_s21  ;;  %p743_p5 = scmp.lt.s32.totalorder %s737_s21, %s737_s21 }
   0xb   :  { %p744_p6 = por %p743_p5, %p742_p4 }
   0xd   :  { %p745_p7 = pnand %p744_p6, %p738_p3 }
   0xf   :  { %748 = shalt.err (!%p745_p7)
}
  0x10   :  { %s798_s22 = smov 64   ;;  %s799_s23 = smov 4  }
  0x11   :  { %33 = dma.hbm_to_vmem [thread:$0]  %s921_s1, 2048, %s28_s13, [#allocation5], %s798_s22, %s798_s22, %s799_s23  }
  0x12   :  { %s800_s26 = smov [#allocation2]   ;;  %s749_s30 = scalar_lea.hbm %s920_s0, 256 }
  0x13   :  { %s15_s27 = sshll.u32 %s800_s26, 4  ;;  %p750_p8 = scmp.ne.s32.totalorder %s920_s0, %s749_s30  ;;  %s16_s27 = int_to_ptr.vmem [resolvable:$true] %s15_s27 }
  0x14   :  { %p753_p9 = scmp.lt.u32.totalorder %s749_s30, %s920_s0 }
  0x16   :  { %p755_p10 = pnand %p753_p9, %p750_p8 }
  0x18   :  { %758 = shalt.err (!%p755_p10)
}
  0x19   :  { %s759_s8 = scalar_lea.vmem %s16_s27, 256  ;;  %p764_p12 = scmp.lt.s32.totalorder %s16_s27, %s16_s27 }
  0x1a   :  { %p760_p11 = scmp.ne.s32.totalorder %s16_s27, %s759_s8  ;;  %p765_p13 = scmp.lt.s32.totalorder %s759_s8, %s759_s8 }
  0x1c   :  { %p766_p0 = por %p765_p13, %p764_p12 }
  0x1e   :  { %p767_p1 = pnand %p766_p0, %p760_p11 }
  0x20   :  { %770 = shalt.err (!%p767_p1)
}
  0x21   :  { %s801_s1 = smov 128   ;;  %s802_s9 = smov 8  }
  0x22   :  { %21 = dma.hbm_to_vmem [thread:$0]  %s920_s0, 256, %s16_s27, [#allocation3], %s801_s1, %s801_s1, %s802_s9  }
  0x23   :  { %s803_s12 = smov [#allocation6]   ;;  %s771_s16 = scalar_lea.hbm %s922_s2, 256 }
  0x24   :  { %s39_s13 = sshll.u32 %s803_s12, 4  ;;  %p772_p2 = scmp.ne.s32.totalorder %s922_s2, %s771_s16  ;;  %s40_s13 = int_to_ptr.vmem [resolvable:$true] %s39_s13 }
  0x25   :  { %p775_p3 = scmp.lt.u32.totalorder %s771_s16, %s922_s2 }
  0x27   :  { %p777_p4 = pnand %p775_p3, %p772_p2 }
  0x29   :  { %780 = shalt.err (!%p777_p4)
}
  0x2a   :  { %s781_s21 = scalar_lea.vmem %s40_s13, 256  ;;  %p786_p6 = scmp.lt.s32.totalorder %s40_s13, %s40_s13 }
  0x2b   :  { %p782_p5 = scmp.ne.s32.totalorder %s40_s13, %s781_s21  ;;  %p787_p7 = scmp.lt.s32.totalorder %s781_s21, %s781_s21 }
  0x2d   :  { %p788_p8 = por %p787_p7, %p786_p6 }
  0x2f   :  { %p789_p9 = pnand %p788_p8, %p782_p5 }
  0x31   :  { %792 = shalt.err (!%p789_p9)
}
  0x32   :  { %45 = dma.hbm_to_vmem [thread:$0]  %s922_s2, 256, %s40_s13, [#allocation5], %s801_s1, %s801_s1, %s802_s9  }
  0x33   :  { %793 = dma.done.wait [#allocation3], 256  }
  0x34   :  { %794 = vsyncadd [#allocation3], 4294967040 }
  0x35   :  { %795 = dma.done.wait [#allocation5], 2304  }
  0x36   :  { %796 = vsyncadd [#allocation5], 4294964992  ;;  %v804_v0 = vmov 0.0   ;;  %vm805_vm0 = vmmov 0   ;;  %v703_v1 = vld [vmem:[#allocation4] sm:$0xff]   ;;  %v704_v2 = vld [vmem:[#allocation4 + $0x8] sm:$0xff]   ;;  %v194_v41 = vlaneseq }
  0x37   :  { %642 = vmatprep.subr.bf16.mxu0 %v804_v0  ;;  %658 = vmatprep.mubr.msk.bf16.mxu0 %vm805_vm0, %v804_v0  ;;  %v705_v3 = vld [vmem:[#allocation4 + $0x10] sm:$0xff]   ;;  %v706_v4 = vld [vmem:[#allocation4 + $0x18] sm:$0xff]   ;;  %v707_v5 = vld [vmem:[#allocation4 + $0x20] sm:$0xff]   ;;  %vm243_vm1 = vcmask 523264   ;;  %vm349_vm2 = vcmask 261120   ;;  %vm447_vm3 = vcmask 130048  }
  0x38   :  { %662 = vmatprep.subr.bf16.mxu1 %v804_v0  ;;  %670 = vmatprep.mubr.msk.bf16.mxu1 %vm805_vm0, %v804_v0  ;;  %v708_v6 = vld [vmem:[#allocation4 + $0x28] sm:$0xff]   ;;  %v709_v7 = vld [vmem:[#allocation4 + $0x30] sm:$0xff]   ;;  %v710_v8 = vld [vmem:[#allocation4 + $0x38] sm:$0xff]   ;;  %v882_v42 = vshrl.u32 %v194_v41, 7 }
  0x39   :  { %643 = vmatpush3.bf16.msra.mxu0 %v703_v1  ;;  %v58_v9 = vld [vmem:[#allocation2] sm:$0xff]  ;;  %v59_v10 = vld [vmem:[#allocation2 + $0x8] sm:$0xff]  ;;  %v711_v12 = vld [vmem:[#allocation4 + $0x40] sm:$0xff]  }
  0x3a   :  { %644 = vmatprep.subr.bf16.mxu0 %v804_v0  ;;  %v76_v11 = vpack.c.bf16 %v59_v10, %v58_v9  ;;  %663 = vmatpush3.bf16.msra.mxu1 %v711_v12  ;;  %v712_v13 = vld [vmem:[#allocation4 + $0x48] sm:$0xff]   ;;  %v713_v14 = vld [vmem:[#allocation4 + $0x50] sm:$0xff]   ;;  %v714_v15 = vld [vmem:[#allocation4 + $0x58] sm:$0xff]   ;;  %v196_v44 = vsub.s32 0, %v882_v42  ;;  %v202_v52 = vsub.s32 4, %v882_v42 }
  0x3b   :  { %664 = vmatprep.subr.bf16.mxu1 %v804_v0  ;;  %v884_v43 = vld [vmem:[#allocation6] sm:$0xff]  ;;  %v716_v63 = vld [vmem:[#allocation4 + $0x68] sm:$0xff]  }
  0x3c   :  { %v715_v62 = vld [vmem:[#allocation4 + $0x60] sm:$0xff]  }
  0x3d   :  { %645 = vmatpush3.bf16.msra.mxu0 %v704_v2 }
  0x3e   :  { %646 = vmatprep.subr.bf16.mxu0 %v804_v0  ;;  %665 = vmatpush3.bf16.msra.mxu1 %v712_v13 }
  0x3f   :  { %666 = vmatprep.subr.bf16.mxu1 %v804_v0 }
  0x41   :  { %647 = vmatpush3.bf16.msra.mxu0 %v705_v3 }
  0x42   :  { %648 = vmatprep.subr.bf16.mxu0 %v804_v0  ;;  %667 = vmatpush3.bf16.msra.mxu1 %v713_v14 }
  0x43   :  { %668 = vmatprep.subr.bf16.mxu1 %v804_v0 }
  0x45   :  { %649 = vmatpush3.bf16.msra.mxu0 %v706_v4 }
  0x46   :  { %650 = vmatprep.subr.bf16.mxu0 %v804_v0  ;;  %669 = vmatpush3.bf16.msra.mxu1 %v714_v15 }
  0x47   :  { %674 = vmatprep.subr.bf16.mxu1 %v804_v0 }
  0x49   :  { %651 = vmatpush3.bf16.msra.mxu0 %v707_v5 }
  0x4a   :  { %652 = vmatprep.subr.bf16.mxu0 %v804_v0 }
  0x4d   :  { %653 = vmatpush3.bf16.msra.mxu0 %v708_v6 }
  0x4e   :  { %654 = vmatprep.subr.bf16.mxu0 %v804_v0 }
  0x51   :  { %655 = vmatpush3.bf16.msra.mxu0 %v709_v7 }
  0x52   :  { %656 = vmatprep.subr.bf16.mxu0 %v804_v0 }
  0x55   :  { %657 = vmatpush3.bf16.msra.mxu0 %v710_v8 }
  0x56   :  { %688 = vmatprep.subr.bf16.mxu0 %v804_v0 }
  0x58   :  { %659 = vmatmul.mubr.bf16.vlgmr.msra.gmra.mrb[0].mxu0 %v76_v11 }
  0x59   :  { %690 = vmatprep.mubr.msk.bf16.mxu0 %vm805_vm0, %v804_v0 }
 0x12b   :  { %v159_v16 = vpop.f32.mrb[0].mxu0 }
 0x12c   :  { %v660_v17 = vpop.f32.mrb[1].mxu0  ;;  %v173_v19 = vmul.f32 %v159_v16, %v159_v16 }
 0x12d   :  { %v162_v18 = vpop.f32.mrb[2].mxu0 }
 0x12e   :  { %v166_v20 = vadd.f32 %v162_v18, %v159_v16  ;;  %v174_v21 = vmul.f32 %v162_v18, %v162_v18  ;;  %v661_v22 = vpop.f32.mrb[3].mxu0 }
 0x130   :  { %v167_v23 = vrot.slane %v166_v20, 4  ;;  %v175_v24 = vadd.f32 %v174_v21, %v173_v19 }
 0x132   :  { %v168_v25 = vadd.f32 %v167_v23, %v166_v20  ;;  %v176_v26 = vrot.slane %v175_v24, 4 }
 0x134   :  { %v169_v27 = vrot.slane %v168_v25, 2  ;;  %v177_v28 = vadd.f32 %v176_v26, %v175_v24  ;;  %v318_v26 = vsub.s32 1, %v882_v42 }
 0x136   :  { %v170_v29 = vadd.f32 %v169_v27, %v168_v25  ;;  %v178_v30 = vrot.slane %v177_v28, 2 }
 0x138   :  { %v171_v31 = vrot.slane %v170_v29, 1  ;;  %v179_v32 = vadd.f32 %v178_v30, %v177_v28 }
 0x13a   :  { %v172_v33 = vadd.f32 %v171_v31, %v170_v29  ;;  %v180_v34 = vrot.slane %v179_v32, 1 }
 0x13c   :  { %v181_v35 = vadd.f32 %v180_v34, %v179_v32  ;;  %v182_v36 = vmul.f32 0.0625, %v172_v33  ;;  %v324_v34 = vsub.s32 5, %v882_v42 }
 0x13e   :  { %v183_v37 = vmul.f32 0.0625, %v181_v35  ;;  %v184_v38 = vmul.f32 %v182_v36, %v182_v36 }
 0x140   :  { %v185_v39 = vsub.f32 %v183_v37, %v184_v38 }
 0x142   :  { %v186_v40 = vadd.f32 1e-05, %v185_v39 }
 0x144   :  { %719 = vrsqrt.f32 %v186_v40 }
 0x14e   :  { %v720_v45 = vpop.eup %719 }
 0x14f   :  { %v188_v46 = vmul.f32 %v720_v45, %v884_v43 }
 0x151   :  { %v189_v47 = vmul.f32 %v188_v46, %v182_v36  ;;  %v197_v48 = vrot.slane %v188_v46, %v196_v44 }
 0x153   :  { %v191_v49 = vrot.slane %v189_v47, 4  ;;  %v198_v50 = vmul.f32 %v197_v48, %v159_v16  ;;  %v199_v51 = vmul.f32 %v197_v48, %v162_v18  ;;  %v717_v47 = vld [vmem:[#allocation4 + $0x70] sm:$0xff]  }
 0x155   :  { %v193_v53 = vsub.f32 %v884_v43, %v191_v49 }
 0x157   :  { %v203_v54 = vrot.slane %v193_v53, %v202_v52 }
 0x159   :  { %v204_v55 = vadd.f32 %v203_v54, %v198_v50  ;;  %v205_v56 = vadd.f32 %v203_v54, %v199_v51 }
 0x15b   :  { %v207_v57 = vmul.f32 0.01, %v205_v56  ;;  %v206_v58 = vmul.f32 0.01, %v204_v55 }
 0x15d   :  { %v209_v59 = vmax.f32 %v205_v56, %v207_v57  ;;  %v208_v60 = vmax.f32 %v204_v55, %v206_v58 }
 0x15f   :  { %v218_v61 = vpack.c.bf16 %v209_v59, %v208_v60 }
 0x161   :  { %671 = vmatmul.mubr.msk.bf16.vlgmr.msra.gmra.mrb[0].mxu1 %vm243_vm1, %v218_v61 }
 0x162   :  { %678 = vmatprep.mubr.msk.bf16.mxu1 %vm805_vm0, %v804_v0  ;;  %675 = vmatpush3.bf16.msra.mxu1 %v715_v62 }
 0x163   :  { %676 = vmatprep.subr.bf16.mxu1 %v804_v0 }
 0x166   :  { %677 = vmatpush3.bf16.msra.mxu1 %v716_v63 }
 0x167   :  { %682 = vmatprep.subr.bf16.mxu1 %v804_v0 }
 0x234   :  { %v281_v1 = vpop.f32.mrb[0].mxu1 }
 0x235   :  { %v672_v2 = vpop.f32.mrb[1].mxu1  ;;  %v295_v4 = vmul.f32 %v281_v1, %v281_v1 }
 0x236   :  { %v284_v3 = vpop.f32.mrb[2].mxu1 }
 0x237   :  { %v288_v5 = vadd.f32 %v284_v3, %v281_v1  ;;  %v296_v6 = vmul.f32 %v284_v3, %v284_v3  ;;  %v673_v7 = vpop.f32.mrb[3].mxu1 }
 0x239   :  { %v289_v8 = vrot.slane %v288_v5, 4  ;;  %v297_v9 = vadd.f32 %v296_v6, %v295_v4 }
 0x23b   :  { %v290_v10 = vadd.f32 %v289_v8, %v288_v5  ;;  %v298_v11 = vrot.slane %v297_v9, 4 }
 0x23d   :  { %v291_v12 = vrot.slane %v290_v10, 2  ;;  %v299_v13 = vadd.f32 %v298_v11, %v297_v9  ;;  %v424_v9 = vsub.s32 2, %v882_v42 }
 0x23f   :  { %v292_v14 = vadd.f32 %v291_v12, %v290_v10  ;;  %v300_v15 = vrot.slane %v299_v13, 2 }
 0x241   :  { %v293_v16 = vrot.slane %v292_v14, 1  ;;  %v301_v17 = vadd.f32 %v300_v15, %v299_v13 }
 0x243   :  { %v294_v18 = vadd.f32 %v293_v16, %v292_v14  ;;  %v302_v19 = vrot.slane %v301_v17, 1 }
 0x245   :  { %v303_v20 = vadd.f32 %v302_v19, %v301_v17  ;;  %v304_v21 = vmul.f32 0.0625, %v294_v18  ;;  %v430_v17 = vsub.s32 6, %v882_v42 }
 0x247   :  { %v305_v22 = vmul.f32 0.0625, %v303_v20  ;;  %v306_v23 = vmul.f32 %v304_v21, %v304_v21 }
 0x249   :  { %v307_v24 = vsub.f32 %v305_v22, %v306_v23 }
 0x24b   :  { %v308_v25 = vadd.f32 1e-05, %v307_v24 }
 0x24d   :  { %721 = vrsqrt.f32 %v308_v25 }
 0x257   :  { %v722_v27 = vpop.eup %721 }
 0x258   :  { %v310_v28 = vmul.f32 %v722_v27, %v884_v43  ;;  %v718_v27 = vld [vmem:[#allocation4 + $0x78] sm:$0xff]  }
 0x259   :  { %689 = vmatpush3.bf16.msra.mxu0 %v718_v27 }
 0x25a   :  { %v311_v29 = vmul.f32 %v310_v28, %v304_v21  ;;  %v319_v30 = vrot.slane %v310_v28, %v318_v26 }
 0x25c   :  { %v313_v31 = vrot.slane %v311_v29, 4  ;;  %v320_v32 = vmul.f32 %v319_v30, %v281_v1  ;;  %v321_v33 = vmul.f32 %v319_v30, %v284_v3 }
 0x25e   :  { %v315_v35 = vsub.f32 %v884_v43, %v313_v31 }
 0x260   :  { %v325_v36 = vrot.slane %v315_v35, %v324_v34 }
 0x262   :  { %v326_v37 = vadd.f32 %v325_v36, %v320_v32  ;;  %v327_v38 = vadd.f32 %v325_v36, %v321_v33 }
 0x264   :  { %v328_v39 = vmul.f32 0.01, %v326_v37  ;;  %v329_v40 = vmul.f32 0.01, %v327_v38 }
 0x266   :  { %v330_v41 = vmax.f32 %v326_v37, %v328_v39  ;;  %v331_v45 = vmax.f32 %v327_v38, %v329_v40 }
 0x268   :  { %v336_v46 = vpack.c.bf16 %v331_v45, %v330_v41 }
 0x26a   :  { %679 = vmatmul.mubr.msk.bf16.vlgmr.msra.gmra.mrb[4].mxu1 %vm349_vm2, %v336_v46 }
 0x26b   :  { %684 = vmatprep.mubr.msk.bf16.mxu1 %vm805_vm0, %v804_v0  ;;  %683 = vmatpush3.bf16.msra.mxu1 %v717_v47 }
 0x33d   :  { %v387_v48 = vpop.f32.mrb[4].mxu1 }
 0x33e   :  { %v680_v49 = vpop.f32.mrb[5].mxu1  ;;  %v401_v51 = vmul.f32 %v387_v48, %v387_v48 }
 0x33f   :  { %v390_v50 = vpop.f32.mrb[6].mxu1 }
 0x340   :  { %v394_v52 = vadd.f32 %v390_v50, %v387_v48  ;;  %v402_v53 = vmul.f32 %v390_v50, %v390_v50  ;;  %v681_v54 = vpop.f32.mrb[7].mxu1 }
 0x342   :  { %v395_v55 = vrot.slane %v394_v52, 4  ;;  %v403_v56 = vadd.f32 %v402_v53, %v401_v51 }
 0x344   :  { %v396_v57 = vadd.f32 %v395_v55, %v394_v52  ;;  %v404_v58 = vrot.slane %v403_v56, 4 }
 0x346   :  { %v397_v59 = vrot.slane %v396_v57, 2  ;;  %v405_v60 = vadd.f32 %v404_v58, %v403_v56  ;;  %v522_v56 = vsub.s32 3, %v882_v42 }
 0x348   :  { %v398_v61 = vadd.f32 %v397_v59, %v396_v57  ;;  %v406_v62 = vrot.slane %v405_v60, 2 }
 0x34a   :  { %v399_v63 = vrot.slane %v398_v61, 1  ;;  %v407_v1 = vadd.f32 %v406_v62, %v405_v60 }
 0x34c   :  { %v400_v0 = vadd.f32 %v399_v63, %v398_v61  ;;  %v408_v2 = vrot.slane %v407_v1, 1 }
 0x34e   :  { %v409_v3 = vadd.f32 %v408_v2, %v407_v1  ;;  %v410_v4 = vmul.f32 0.0625, %v400_v0  ;;  %v528_v1 = vsub.s32 7, %v882_v42 }
 0x350   :  { %v411_v5 = vmul.f32 0.0625, %v409_v3  ;;  %v412_v6 = vmul.f32 %v410_v4, %v410_v4 }
 0x352   :  { %v413_v7 = vsub.f32 %v411_v5, %v412_v6 }
 0x354   :  { %v414_v8 = vadd.f32 1e-05, %v413_v7 }
 0x356   :  { %723 = vrsqrt.f32 %v414_v8 }
 0x360   :  { %v724_v10 = vpop.eup %723 }
 0x361   :  { %v416_v11 = vmul.f32 %v724_v10, %v884_v43  ;;  %v57_v10 = vld [vmem:[#allocation6 + $0x8] sm:$0xff] }
 0x363   :  { %v417_v12 = vmul.f32 %v416_v11, %v410_v4  ;;  %v425_v13 = vrot.slane %v416_v11, %v424_v9  ;;  %v542_v11 = vrot.slane %v57_v10, %v196_v44 }
 0x365   :  { %v419_v14 = vrot.slane %v417_v12, 4  ;;  %v426_v15 = vmul.f32 %v425_v13, %v387_v48  ;;  %v427_v16 = vmul.f32 %v425_v13, %v390_v50 }
 0x367   :  { %v421_v18 = vsub.f32 %v884_v43, %v419_v14 }
 0x369   :  { %v431_v19 = vrot.slane %v421_v18, %v430_v17 }
 0x36b   :  { %v432_v20 = vadd.f32 %v431_v19, %v426_v15  ;;  %v433_v21 = vadd.f32 %v431_v19, %v427_v16 }
 0x36d   :  { %v434_v22 = vmul.f32 0.01, %v432_v20  ;;  %v435_v23 = vmul.f32 0.01, %v433_v21 }
 0x36f   :  { %v436_v24 = vmax.f32 %v432_v20, %v434_v22  ;;  %v437_v25 = vmax.f32 %v433_v21, %v435_v23 }
 0x371   :  { %v440_v26 = vpack.c.bf16 %v437_v25, %v436_v24 }
 0x373   :  { %685 = vmatmul.mubr.msk.bf16.vlgmr.msra.gmra.mrb[8].mxu1 %vm447_vm3, %v440_v26 }
 0x446   :  { %v485_v28 = vpop.f32.mrb[8].mxu1 }
 0x447   :  { %v686_v29 = vpop.f32.mrb[9].mxu1  ;;  %v499_v31 = vmul.f32 %v485_v28, %v485_v28 }
 0x448   :  { %v488_v30 = vpop.f32.mrb[10].mxu1 }
 0x449   :  { %v492_v32 = vadd.f32 %v488_v30, %v485_v28  ;;  %v500_v33 = vmul.f32 %v488_v30, %v488_v30  ;;  %v687_v34 = vpop.f32.mrb[11].mxu1 }
 0x44b   :  { %v493_v35 = vrot.slane %v492_v32, 4  ;;  %v501_v36 = vadd.f32 %v500_v33, %v499_v31 }
 0x44d   :  { %v494_v37 = vadd.f32 %v493_v35, %v492_v32  ;;  %v502_v38 = vrot.slane %v501_v36, 4 }
 0x44f   :  { %v495_v39 = vrot.slane %v494_v37, 2  ;;  %v503_v40 = vadd.f32 %v502_v38, %v501_v36 }
 0x451   :  { %v496_v41 = vadd.f32 %v495_v39, %v494_v37  ;;  %v504_v45 = vrot.slane %v503_v40, 2 }
 0x453   :  { %v497_v46 = vrot.slane %v496_v41, 1  ;;  %v505_v47 = vadd.f32 %v504_v45, %v503_v40 }
 0x455   :  { %v498_v48 = vadd.f32 %v497_v46, %v496_v41  ;;  %v506_v49 = vrot.slane %v505_v47, 1 }
 0x457   :  { %v507_v50 = vadd.f32 %v506_v49, %v505_v47  ;;  %v508_v51 = vmul.f32 0.0625, %v498_v48 }
 0x459   :  { %v509_v52 = vmul.f32 0.0625, %v507_v50  ;;  %v510_v53 = vmul.f32 %v508_v51, %v508_v51 }
 0x45b   :  { %v511_v54 = vsub.f32 %v509_v52, %v510_v53 }
 0x45d   :  { %v512_v55 = vadd.f32 1e-05, %v511_v54 }
 0x45f   :  { %725 = vrsqrt.f32 %v512_v55 }
 0x469   :  { %v726_v57 = vpop.eup %725 }
 0x46a   :  { %v514_v58 = vmul.f32 %v726_v57, %v884_v43 }
 0x46c   :  { %v515_v59 = vmul.f32 %v514_v58, %v508_v51  ;;  %v523_v60 = vrot.slane %v514_v58, %v522_v56 }
 0x46e   :  { %v517_v61 = vrot.slane %v515_v59, 4  ;;  %v524_v62 = vmul.f32 %v523_v60, %v485_v28  ;;  %v525_v63 = vmul.f32 %v523_v60, %v488_v30 }
 0x470   :  { %v519_v0 = vsub.f32 %v884_v43, %v517_v61 }
 0x472   :  { %v529_v2 = vrot.slane %v519_v0, %v528_v1 }
 0x474   :  { %v530_v3 = vadd.f32 %v529_v2, %v524_v62  ;;  %v531_v4 = vadd.f32 %v529_v2, %v525_v63 }
 0x476   :  { %v532_v5 = vmul.f32 0.01, %v530_v3  ;;  %v533_v6 = vmul.f32 0.01, %v531_v4 }
 0x478   :  { %v534_v7 = vmax.f32 %v530_v3, %v532_v5  ;;  %v535_v8 = vmax.f32 %v531_v4, %v533_v6 }
 0x47a   :  { %v538_v9 = vpack.c.bf16 %v535_v8, %v534_v7 }
 0x47c   :  { %691 = vmatmul.mubr.msk.bf16.vlgmr.msra.gmra.mrb[4].mxu0 %vm447_vm3, %v538_v9 }
 0x54f   :  { %v586_v12 = vpop.f32.mrb[4].mxu0 }
 0x550   :  { %v587_v13 = vadd.f32 %v586_v12, %v542_v11  ;;  %v692_v14 = vpop.f32.mrb[5].mxu0 }
 0x551   :  { %v589_v15 = vpop.f32.mrb[6].mxu0 }
 0x552   :  { %593 = vst [vmem:[%s923_s3] sm:$0xff] %v587_v13  ;;  %v590_v43 = vadd.f32 %v589_v15, %v542_v11  ;;  %v693_v16 = vpop.f32.mrb[7].mxu0 }
 0x554   :  { %594 = vst [vmem:[%s923_s3 + $0x8] sm:$0xff] %v590_v43 }
 0x555   :  { %599 = vsyncpa [#allocation3], 1 }
 0x556   :  { %600 = vsyncpa [#allocation5], 1 }

</bundles_post_ra>
